<compile_context>
chip_gen: v7x
topology: tpu7x:2x2x1
jax: 0.10.0
libtpu: 0.0.40
codegen_flags: <defaults>
</compile_context>

<pallas_src>
import numpy as np

import jax
import jax.numpy as jnp
from jax import lax
from jax.experimental import pallas as pl
from jax.experimental.pallas import tpu as pltpu


# ---------------------------------------------------------------------------
# Kernel
# ---------------------------------------------------------------------------
def _conv_block_att_kernel(x_ref, w3b_ref, w1k_ref, b_ref, o_ref, patch_ref):
    # x_ref    : (Nb, H+2, (W+2)*Cin)  padded NHWC rows, (W+2, Cin) flattened on lanes
    # w3b_ref  : (3*band, W*Cout)      banded 3x3-conv weight, BN1 scale folded in
    # w1k_ref  : (W*Cout, W*Cout)      kron(I_W, w1 * s2)  (1x1 conv, BN2 scale folded)
    # b_ref    : (2, W*Cout)           row0 = tile(b1, W), row1 = tile(b2, W)
    # o_ref    : (Nb, H, W*Cout)       lane-dense output block
    # patch_ref: (Nb, H, 3*band)       VMEM scratch holding the banded patch
    nb, hp2, wci = x_ref.shape
    h = hp2 - 2
    band = patch_ref.shape[2] // 3          # lane-padded band width (multiple of 128)
    wc = o_ref.shape[2]                     # W * Cout

    # Zero the scratch once so the lane-padding columns of each band stay 0
    # (scratch persists across grid steps; the pad columns are never rewritten).
    @pl.when(pl.program_id(0) == 0)
    def _():
        patch_ref[...] = jnp.zeros_like(patch_ref)

    # Row-banded im2col: band dy holds padded input rows h+dy (dy = 0,1,2).
    # Three stores at 128-aligned lane offsets -- no per-tap slice+reshape copies.
    for dy in range(3):
        patch_ref[:, :, dy * band: dy * band + wci] = x_ref[:, dy:dy + h, :]

    # (Nb, H, 3*band) -> (Nb*H, 3*band): pure major-dim merge (no relayout).
    lhs = patch_ref[...].reshape(nb * h, 3 * band)

    # 3x3 conv (+ folded BN1 scale) as ONE MXU matmul; the result is already in
    # the lane-dense (Nb*H, W*Cout) layout.
    y = jnp.dot(lhs.astype(w3b_ref.dtype), w3b_ref[...],
                preferred_element_type=jnp.float32)
    y = jnp.maximum(y + b_ref[0:1, :], 0.0)              # BN1 bias + ReLU (lane-dense)

    # 1x1 conv (+ folded BN2 scale) as a block-diagonal 128x128 matmul, staying
    # lane-dense (proper MXU K/N instead of K=N=8).
    z = jnp.dot(y.astype(w1k_ref.dtype), w1k_ref[...],
                preferred_element_type=jnp.float32)
    z = jax.nn.sigmoid(z + b_ref[1:2, :])                # BN2 bias + sigmoid (lane-dense)

    # (Nb*H, W*Cout) -> (Nb, H, W*Cout): major-dim split, unmasked lane-dense store.
    o_ref[...] = z.reshape(nb, h, wc).astype(o_ref.dtype)


# ---------------------------------------------------------------------------
# One-time host-side parameter packing (fold BN scales, build banded weights)
# ---------------------------------------------------------------------------
def pack_params(params, H, W):
    w3 = np.asarray(params["w3"], np.float32)            # (3,3,Cin,Cout) HWIO
    w1 = np.asarray(params["w1"], np.float32)            # (Cout,Cout), w1[ci,co]
    s1 = np.asarray(params["s1"], np.float32).reshape(-1)
    b1 = np.asarray(params["b1"], np.float32).reshape(-1)
    s2 = np.asarray(params["s2"], np.float32).reshape(-1)
    b2 = np.asarray(params["b2"], np.float32).reshape(-1)

    cin, cout = w3.shape[2], w3.shape[3]
    wc = W * cout                                        # lane-dense output width
    wci = (W + 2) * cin                                  # flattened padded input row
    band = ((wci + 127) // 128) * 128                    # lane-pad each dy band

    # Fold per-output-channel BN scales into the conv weights (exact).
    w3s = w3 * s1[None, None, None, :]                   # (3,3,Cin,Cout)
    w1s = w1 * s2[None, :]                               # (Cout,Cout)

    # Banded 3x3-conv weight:
    #   lhs col = dy*band + ww*cin + ci   (ww in [0, W+2); pad cols are zero)
    #   out col = w*cout + co
    #   W3band[dy*band + (w+dx)*cin + ci, w*cout + co] = w3s[dy, dx, ci, co]
    w3band = np.zeros((3 * band, wc), np.float32)
    for dy in range(3):
        for dx in range(3):
            for w in range(W):
                r0 = dy * band + (w + dx) * cin
                c0 = w * cout
                w3band[r0:r0 + cin, c0:c0 + cout] = w3s[dy, dx]

    # Block-diagonal 1x1-conv weight and lane-tiled biases.
    w1kron = np.kron(np.eye(W, dtype=np.float32), w1s)   # (wc, wc)
    biases = np.stack([np.tile(b1, W), np.tile(b2, W)]).astype(np.float32)  # (2, wc)

    return {
        "w3band": jnp.asarray(w3band),
        "w1kron": jnp.asarray(w1kron),
        "biases": jnp.asarray(biases),
        "Cin": cin, "Cout": cout, "band": band,
    }


# ---------------------------------------------------------------------------
# Wrapper
# ---------------------------------------------------------------------------
def conv_block_att_pallas(x_nchw, packed, *, block_n=None, use_bf16=False):
    """x_nchw: (N, Cin, H, W) float32 -> (N, Cout, H, W) float32."""
    N, Cin, H, W = x_nchw.shape
    assert Cin == packed["Cin"]
    Cout = packed["Cout"]
    band = packed["band"]
    wc = W * Cout
    wci = (W + 2) * Cin

    w3band, w1kron, biases = packed["w3band"], packed["w1kron"], packed["biases"]
    if use_bf16:
        # v6e/v7x: bf16 MXU operands at full rate; accumulation stays f32.
        # Kept off by default so the f32 reference check holds to 1e-5.
        w3band = w3band.astype(jnp.bfloat16)
        w1kron = w1kron.astype(jnp.bfloat16)

    # Batch multiple images per grid step to amortize per-step overhead.
    # (On v7x with 2 TensorCores, prefer block_n <= N//2 so the "parallel"
    #  batch axis has >= 2 steps to shard across cores.)
    if block_n is None:
        block_n = min(N, 8)
        while N % block_n:
            block_n -= 1
    nb = block_n
    assert N % nb == 0

    # Input prep: NCHW -> padded NHWC, flattened to (N, H+2, (W+2)*Cin).
    # One transpose + pad on a tiny input; the trailing reshape is free.
    x = jnp.transpose(x_nchw, (0, 2, 3, 1))
    x = jnp.pad(x, ((0, 0), (1, 1), (1, 1), (0, 0)))
    x = x.reshape(N, H + 2, wci)

    out = pl.pallas_call(
        _conv_block_att_kernel,
        out_shape=jax.ShapeDtypeStruct((N, H, wc), jnp.float32),
        grid_spec=pltpu.PrefetchScalarGridSpec(
            num_scalar_prefetch=0,
            grid=(N // nb,),
            in_specs=[
                pl.BlockSpec((nb, H + 2, wci), lambda i: (i, 0, 0)),
                pl.BlockSpec((3 * band, wc), lambda i: (0, 0)),
                pl.BlockSpec((wc, wc), lambda i: (0, 0)),
                pl.BlockSpec((2, wc), lambda i: (0, 0)),
            ],
            out_specs=pl.BlockSpec((nb, H, wc), lambda i: (i, 0, 0)),
            scratch_shapes=[pltpu.VMEM((nb, H, 3 * band), jnp.float32)],
        ),
        compiler_params=pltpu.CompilerParams(
            dimension_semantics=("parallel",),
            vmem_limit_bytes=32 * 1024 * 1024,
        ),
    )(x, w3band, w1kron, biases)

    # (N, H, W*Cout) -> NCHW.  The reshape is free; the transpose is the one
    # remaining wrapper-side layout op (forced by the NCHW model boundary).
    return jnp.transpose(out.reshape(N, H, W, Cout), (0, 3, 1, 2))


# ---------------------------------------------------------------------------
# Parameter init + pure-JAX reference (eval-mode BN)
# ---------------------------------------------------------------------------
def init_params(key, ch_in, ch_out, eps=1e-5):
    k = jax.random.split(key, 10)
    w3_oihw = 0.1 * jax.random.normal(k[0], (ch_out, ch_in, 3, 3), jnp.float32)
    w1_oihw = 0.1 * jax.random.normal(k[1], (ch_out, ch_out, 1, 1), jnp.float32)
    w3 = jnp.transpose(w3_oihw, (2, 3, 1, 0))                 # (3,3,Cin,Cout)
    w1 = jnp.transpose(w1_oihw[:, :, 0, 0], (1, 0))           # (Cout, Cout)

    g1 = 1.0 + 0.1 * jax.random.normal(k[2], (ch_out,), jnp.float32)
    be1 = 0.1 * jax.random.normal(k[3], (ch_out,), jnp.float32)
    m1 = 0.1 * jax.random.normal(k[4], (ch_out,), jnp.float32)
    v1 = jnp.abs(1.0 + 0.1 * jax.random.normal(k[5], (ch_out,), jnp.float32))
    g2 = 1.0 + 0.1 * jax.random.normal(k[6], (ch_out,), jnp.float32)
    be2 = 0.1 * jax.random.normal(k[7], (ch_out,), jnp.float32)
    m2 = 0.1 * jax.random.normal(k[8], (ch_out,), jnp.float32)
    v2 = jnp.abs(1.0 + 0.1 * jax.random.normal(k[9], (ch_out,), jnp.float32))

    s1 = g1 / jnp.sqrt(v1 + eps)
    b1 = be1 - m1 * s1
    s2 = g2 / jnp.sqrt(v2 + eps)
    b2 = be2 - m2 * s2

    return {
        "w3": w3, "w1": w1,
        "s1": s1.reshape(1, ch_out), "b1": b1.reshape(1, ch_out),
        "s2": s2.reshape(1, ch_out), "b2": b2.reshape(1, ch_out),
        "_raw": (w3_oihw, w1_oihw, g1, be1, m1, v1, g2, be2, m2, v2, eps),
    }


def reference_jax(x_nchw, params):
    (w3_oihw, w1_oihw, g1, be1, m1, v1, g2, be2, m2, v2, eps) = params["_raw"]
    y = lax.conv_general_dilated(
        x_nchw, w3_oihw, window_strides=(1, 1), padding=((1, 1), (1, 1)),
        dimension_numbers=("NCHW", "OIHW", "NCHW"))
    y = (y - m1[None, :, None, None]) / jnp.sqrt(v1 + eps)[None, :, None, None]
    y = y * g1[None, :, None, None] + be1[None, :, None, None]
    y = jnp.maximum(y, 0.0)
    z = lax.conv_general_dilated(
        y, w1_oihw, window_strides=(1, 1), padding=((0, 0), (0, 0)),
        dimension_numbers=("NCHW", "OIHW", "NCHW"))
    z = (z - m2[None, :, None, None]) / jnp.sqrt(v2 + eps)[None, :, None, None]
    z = z * g2[None, :, None, None] + be2[None, :, None, None]
    return jax.nn.sigmoid(z)


if __name__ == "__main__":
    key = jax.random.PRNGKey(0)
    kx, kp = jax.random.split(key)

    N, ch_in, ch_out, H, W = 2, 4, 8, 16, 16
    x = jax.random.normal(kx, (N, ch_in, H, W), jnp.float32)
    params = init_params(kp, ch_in, ch_out)
    packed = pack_params(params, H, W)

    out = conv_block_att_pallas(x, packed)
    out = jax.block_until_ready(out)

    ref = jax.block_until_ready(reference_jax(x, params))
    assert out.shape == (N, ch_out, H, W)
    err = jnp.max(jnp.abs(out - ref))
    assert jnp.allclose(out, ref, atol=2e-5, rtol=2e-5), f"max err {err}"

    print("KERNEL_OK")
</pallas_src>

<mosaic_0001>
module attributes {stable_mosaic.version = 11 : i64} {
  func.func @_conv_block_att_kernel(%arg0: i32, %arg1: memref<2x18x72xf32, #tpu.memory_space<vmem>>, %arg2: memref<384x128xf32, #tpu.memory_space<vmem>>, %arg3: memref<128x128xf32, #tpu.memory_space<vmem>>, %arg4: memref<2x128xf32, #tpu.memory_space<vmem>>, %arg5: memref<2x16x128xf32, #tpu.memory_space<vmem>>, %arg6: memref<2x16x384xf32, #tpu.memory_space<vmem>>) attributes {dimension_semantics = [#tpu.dimension_semantics<parallel>], iteration_bounds = array<i64: 1>, scalar_prefetch = 0 : i64, scratch_operands = 1 : i64, tpu.core_type = #tpu.core_type<tc>, window_params = [{transform_indices = @transform_0, window_bounds = array<i64: 2, 18, 72>}, {pipeline_mode = #tpu.pipeline_mode<synchronous>, transform_indices = @transform_1, window_bounds = array<i64: 384, 128>}, {pipeline_mode = #tpu.pipeline_mode<synchronous>, transform_indices = @transform_2, window_bounds = array<i64: 128, 128>}, {pipeline_mode = #tpu.pipeline_mode<synchronous>, transform_indices = @transform_3, window_bounds = array<i64: 2, 128>}, {transform_indices = @transform_4, window_bounds = array<i64: 2, 16, 128>}]} {
    %c0_i32 = arith.constant 0 : i32
    %0 = arith.cmpi eq, %arg0, %c0_i32 : i32
    %1 = arith.extui %0 : i1 to i32
    %c0_i32_0 = arith.constant 0 : i32
    %2 = arith.cmpi ne, %1, %c0_i32_0 : i32
    scf.if %2 {
      %cst_31 = arith.constant 0.000000e+00 : f32
      %30 = vector.broadcast %cst_31 : f32 to vector<2x16x384xf32>
      %c0_32 = arith.constant 0 : index
      %c0_33 = arith.constant 0 : index
      %c0_34 = arith.constant 0 : index
      %31 = vector.load %arg6[%c0_32, %c0_33, %c0_34] : memref<2x16x384xf32, #tpu.memory_space<vmem>>, vector<2x16x384xf32>
      tpu.vector_store %arg6[%c0_32, %c0_33, %c0_34], %30 {strides = array<i32>} : memref<2x16x384xf32, #tpu.memory_space<vmem>>, vector<2x16x384xf32>,
    } else {
    }
    %c0 = arith.constant 0 : index
    %c0_1 = arith.constant 0 : index
    %c0_2 = arith.constant 0 : index
    %3 = vector.load %arg1[%c0, %c0_1, %c0_2] : memref<2x18x72xf32, #tpu.memory_space<vmem>>, vector<2x16x72xf32>
    %c0_3 = arith.constant 0 : index
    %c0_4 = arith.constant 0 : index
    %c0_5 = arith.constant 0 : index
    %4 = vector.load %arg6[%c0_3, %c0_4, %c0_5] : memref<2x16x384xf32, #tpu.memory_space<vmem>>, vector<2x16x72xf32>
    tpu.vector_store %arg6[%c0_3, %c0_4, %c0_5], %3 {strides = array<i32>} : memref<2x16x384xf32, #tpu.memory_space<vmem>>, vector<2x16x72xf32>,
    %c0_6 = arith.constant 0 : index
    %c1 = arith.constant 1 : index
    %c0_7 = arith.constant 0 : index
    %5 = vector.load %arg1[%c0_6, %c1, %c0_7] : memref<2x18x72xf32, #tpu.memory_space<vmem>>, vector<2x16x72xf32>
    %c0_8 = arith.constant 0 : index
    %c0_9 = arith.constant 0 : index
    %c128 = arith.constant 128 : index
    %6 = vector.load %arg6[%c0_8, %c0_9, %c128] : memref<2x16x384xf32, #tpu.memory_space<vmem>>, vector<2x16x72xf32>
    tpu.vector_store %arg6[%c0_8, %c0_9, %c128], %5 {strides = array<i32>} : memref<2x16x384xf32, #tpu.memory_space<vmem>>, vector<2x16x72xf32>,
    %c0_10 = arith.constant 0 : index
    %c2 = arith.constant 2 : index
    %c0_11 = arith.constant 0 : index
    %7 = vector.load %arg1[%c0_10, %c2, %c0_11] : memref<2x18x72xf32, #tpu.memory_space<vmem>>, vector<2x16x72xf32>
    %c0_12 = arith.constant 0 : index
    %c0_13 = arith.constant 0 : index
    %c256 = arith.constant 256 : index
    %8 = vector.load %arg6[%c0_12, %c0_13, %c256] : memref<2x16x384xf32, #tpu.memory_space<vmem>>, vector<2x16x72xf32>
    tpu.vector_store %arg6[%c0_12, %c0_13, %c256], %7 {strides = array<i32>} : memref<2x16x384xf32, #tpu.memory_space<vmem>>, vector<2x16x72xf32>,
    %c0_14 = arith.constant 0 : index
    %c0_15 = arith.constant 0 : index
    %c0_16 = arith.constant 0 : index
    %9 = vector.load %arg6[%c0_14, %c0_15, %c0_16] : memref<2x16x384xf32, #tpu.memory_space<vmem>>, vector<2x16x384xf32>
    %10 = vector.shape_cast %9 : vector<2x16x384xf32> to vector<32x384xf32>
    %c0_17 = arith.constant 0 : index
    %c0_18 = arith.constant 0 : index
    %11 = vector.load %arg2[%c0_17, %c0_18] : memref<384x128xf32, #tpu.memory_space<vmem>>, vector<384x128xf32>
    %cst = arith.constant dense<0.000000e+00> : vector<32x128xf32>
    %12 = tpu.matmul %10, %11, %cst {dimension_numbers = #tpu.dot_dimension_numbers<[1], [0], [0], [1], [0, 0, 1, 1], [], []>} : vector<32x384xf32>, vector<384x128xf32>, vector<32x128xf32> -> vector<32x128xf32>
    %c0_19 = arith.constant 0 : index
    %c0_20 = arith.constant 0 : index
    %13 = vector.load %arg4[%c0_19, %c0_20] : memref<2x128xf32, #tpu.memory_space<vmem>>, vector<1x128xf32>
    %14 = vector.broadcast %13 : vector<1x128xf32> to vector<32x128xf32>
    %15 = arith.addf %12, %14 : vector<32x128xf32>
    %cst_21 = arith.constant 0.000000e+00 : f32
    %16 = vector.broadcast %cst_21 : f32 to vector<32x128xf32>
    %17 = arith.maximumf %15, %16 : vector<32x128xf32>
    %c0_22 = arith.constant 0 : index
    %c0_23 = arith.constant 0 : index
    %18 = vector.load %arg3[%c0_22, %c0_23] : memref<128x128xf32, #tpu.memory_space<vmem>>, vector<128x128xf32>
    %cst_24 = arith.constant dense<0.000000e+00> : vector<32x128xf32>
    %19 = tpu.matmul %17, %18, %cst_24 {dimension_numbers = #tpu.dot_dimension_numbers<[1], [0], [0], [1], [0, 0, 1, 1], [], []>} : vector<32x128xf32>, vector<128x128xf32>, vector<32x128xf32> -> vector<32x128xf32>
    %c1_25 = arith.constant 1 : index
    %c0_26 = arith.constant 0 : index
    %20 = vector.load %arg4[%c1_25, %c0_26] : memref<2x128xf32, #tpu.memory_space<vmem>>, vector<1x128xf32>
    %21 = vector.broadcast %20 : vector<1x128xf32> to vector<32x128xf32>
    %22 = arith.addf %19, %21 : vector<32x128xf32>
    %23 = arith.negf %22 : vector<32x128xf32>
    %24 = math.exp %23 : vector<32x128xf32>
    %cst_27 = arith.constant 1.000000e+00 : f32
    %25 = vector.broadcast %cst_27 : f32 to vector<32x128xf32>
    %26 = arith.addf %25, %24 : vector<32x128xf32>
    %27 = arith.divf %25, %26 : vector<32x128xf32>
    %28 = vector.shape_cast %27 : vector<32x128xf32> to vector<2x16x128xf32>
    %c0_28 = arith.constant 0 : index
    %c0_29 = arith.constant 0 : index
    %c0_30 = arith.constant 0 : index
    %29 = vector.load %arg5[%c0_28, %c0_29, %c0_30] : memref<2x16x128xf32, #tpu.memory_space<vmem>>, vector<2x16x128xf32>
    tpu.vector_store %arg5[%c0_28, %c0_29, %c0_30], %28 {strides = array<i32>} : memref<2x16x128xf32, #tpu.memory_space<vmem>>, vector<2x16x128xf32>,
    return
  }
  func.func @transform_0(%arg0: i32) -> (i32, i32, i32) {
    %c0_i32 = arith.constant 0 : i32
    %c0_i32_0 = arith.constant 0 : i32
    %c0_i32_1 = arith.constant 0 : i32
    return %arg0, %c0_i32, %c0_i32_0 : i32, i32, i32
  }
  func.func @transform_1(%arg0: i32) -> (i32, i32) {
    %c0_i32 = arith.constant 0 : i32
    %c0_i32_0 = arith.constant 0 : i32
    %c0_i32_1 = arith.constant 0 : i32
    return %c0_i32, %c0_i32_0 : i32, i32
  }
  func.func @transform_2(%arg0: i32) -> (i32, i32) {
    %c0_i32 = arith.constant 0 : i32
    %c0_i32_0 = arith.constant 0 : i32
    %c0_i32_1 = arith.constant 0 : i32
    return %c0_i32, %c0_i32_0 : i32, i32
  }
  func.func @transform_3(%arg0: i32) -> (i32, i32) {
    %c0_i32 = arith.constant 0 : i32
    %c0_i32_0 = arith.constant 0 : i32
    %c0_i32_1 = arith.constant 0 : i32
    return %c0_i32, %c0_i32_0 : i32, i32
  }
  func.func @transform_4(%arg0: i32) -> (i32, i32, i32) {
    %c0_i32 = arith.constant 0 : i32
    %c0_i32_0 = arith.constant 0 : i32
    %c0_i32_1 = arith.constant 0 : i32
    return %arg0, %c0_i32, %c0_i32_0 : i32, i32, i32
  }
}

</mosaic_0001>

<bundles_post_ra>
// kernel: tpu_custom_call.1
= control target key start
LH: loop header
LB: loop body
LE: loop exit
PB: predicated region body
PF: predicated region fallthrough
CT: control target
= control target key end

     0   :  { %9 = vsyncpa [#allocation4], 0  ;;  %s980_s0 = inlined_call_operand.vmem [shape: f32[2,18,72], index: 0, kind: input, shape index: {}]   ;;  %s981_s1 = inlined_call_operand.hbm [shape: f32[384,128], index: 1, kind: input, shape index: {}]   ;;  %s982_s2 = inlined_call_operand.hbm [shape: f32[128,128], index: 2, kind: input, shape index: {}]   ;;  %s983_s3 = inlined_call_operand.vmem [shape: f32[2,128], index: 3, kind: input, shape index: {}]   ;;  %s984_s4 = inlined_call_operand.hbm [shape: f32[2,16,128], index: 4, kind: output, shape index: {}]  }
   0x1   :  { %10 = vsyncpa [#allocation7], 0 }
   0x2   :  { %11 = vsyncpa [#allocation5], 0  ;;  %s850_s15 = smov [#allocation3]   ;;  %s778_s19 = scalar_lea.hbm %s981_s1, 6144 }
   0x3   :  { %s19_s16 = sshll.u32 %s850_s15, 4  ;;  %p779_p0 = scmp.ne.s32.totalorder %s981_s1, %s778_s19  ;;  %s20_s16 = int_to_ptr.vmem [resolvable:$true] %s19_s16 }
   0x4   :  { %p782_p1 = scmp.lt.u32.totalorder %s778_s19, %s981_s1 }
   0x6   :  { %p784_p2 = pnand %p782_p1, %p779_p0 }
   0x8   :  { %787 = shalt.err (!%p784_p2)
}
   0x9   :  { %s788_s24 = scalar_lea.vmem %s20_s16, 6144  ;;  %p793_p4 = scmp.lt.s32.totalorder %s20_s16, %s20_s16 }
   0xa   :  { %p789_p3 = scmp.ne.s32.totalorder %s20_s16, %s788_s24  ;;  %p794_p5 = scmp.lt.s32.totalorder %s788_s24, %s788_s24 }
   0xc   :  { %p795_p6 = por %p794_p5, %p793_p4 }
   0xe   :  { %p796_p7 = pnand %p795_p6, %p789_p3 }
  0x10   :  { %799 = shalt.err (!%p796_p7)
}
  0x11   :  { %s851_s25 = smov 128   ;;  %s852_s26 = smov 8  }
  0x12   :  { %25 = dma.hbm_to_vmem [thread:$0]  %s981_s1, 6144, %s20_s16, [#allocation4], %s851_s25, %s851_s25, %s852_s26  }
  0x13   :  { %s853_s29 = smov [#allocation6]   ;;  %s800_s7 = scalar_lea.hbm %s982_s2, 2048 }
  0x14   :  { %s31_s30 = sshll.u32 %s853_s29, 4  ;;  %p801_p8 = scmp.ne.s32.totalorder %s982_s2, %s800_s7  ;;  %s32_s30 = int_to_ptr.vmem [resolvable:$true] %s31_s30 }
  0x15   :  { %p804_p9 = scmp.lt.u32.totalorder %s800_s7, %s982_s2 }
  0x17   :  { %p806_p10 = pnand %p804_p9, %p801_p8 }
  0x19   :  { %809 = shalt.err (!%p806_p10)
}
  0x1a   :  { %s810_s12 = scalar_lea.vmem %s32_s30, 2048  ;;  %p815_p12 = scmp.lt.s32.totalorder %s32_s30, %s32_s30 }
  0x1b   :  { %p811_p11 = scmp.ne.s32.totalorder %s32_s30, %s810_s12  ;;  %p816_p13 = scmp.lt.s32.totalorder %s810_s12, %s810_s12 }
  0x1d   :  { %p817_p0 = por %p816_p13, %p815_p12 }
  0x1f   :  { %p818_p1 = pnand %p817_p0, %p811_p11 }
  0x21   :  { %821 = shalt.err (!%p818_p1)
}
  0x22   :  { %37 = dma.hbm_to_vmem [thread:$0]  %s982_s2, 2048, %s32_s30, [#allocation7], %s851_s25, %s851_s25, %s852_s26  }
  0x23   :  { %844 = dma.done.wait [#allocation4], 6144  }
  0x24   :  { %845 = vsyncadd [#allocation4], 4294961152 }
  0x25   :  { %846 = dma.done.wait [#allocation7], 2048  }
  0x26   :  { %847 = vsyncadd [#allocation7], 4294965248  ;;  %v854_v0 = vmov 0.0   ;;  %v115_v1 = vld [vmem:[#allocation3 + $0x80] sm:$0xff]  ;;  %v116_v2 = vld [vmem:[#allocation3 + $0x88] sm:$0xff]  ;;  %vm66_vm0 = vcmask 588800  }
  0x27   :  { %51 = vst [vmem:[#allocation2 + $0x8] sm:$0xff] %v854_v0  ;;  %50 = vst [vmem:[#allocation2] sm:$0xff] %v854_v0  ;;  %v99_v3 = vld [vmem:[#allocation3] sm:$0xff]  ;;  %v644_v4 = vpack.c.bf16 %v116_v2, %v115_v1  ;;  %v100_v5 = vld [vmem:[#allocation3 + $0x8] sm:$0xff] }
  0x28   :  { %52 = vst [vmem:[#allocation2 + $0x10] sm:$0xff] %v854_v0  ;;  %53 = vst [vmem:[#allocation2 + $0x18] sm:$0xff] %v854_v0  ;;  %v117_v6 = vld [vmem:[#allocation3 + $0x90] sm:$0xff]  ;;  %v118_v7 = vld [vmem:[#allocation3 + $0x98] sm:$0xff]  ;;  %v646_v8 = vpack.c.bf16 %v100_v5, %v99_v3 }
  0x29   :  { %54 = vst [vmem:[#allocation2 + $0x20] sm:$0xff] %v854_v0  ;;  %55 = vst [vmem:[#allocation2 + $0x28] sm:$0xff] %v854_v0  ;;  %v648_v9 = vpack.c.bf16 %v118_v7, %v117_v6  ;;  %v131_v10 = vld [vmem:[#allocation3 + $0x100] sm:$0xff]  ;;  %v132_v11 = vld [vmem:[#allocation3 + $0x108] sm:$0xff]  ;;  %645 = vmatprep.subr.bf16.mxu0 %v644_v4 }
  0x2a   :  { %56 = vst [vmem:[#allocation2 + $0x30] sm:$0xff] %v854_v0  ;;  %57 = vst [vmem:[#allocation2 + $0x38] sm:$0xff] %v854_v0  ;;  %v101_v12 = vld [vmem:[#allocation3 + $0x10] sm:$0xff]  ;;  %v676_v13 = vpack.c.bf16 %v132_v11, %v131_v10  ;;  %v102_v14 = vld [vmem:[#allocation3 + $0x18] sm:$0xff]  ;;  %647 = vmatpush3.bf16.msra.mxu0 %v646_v8 }
  0x2b   :  { %58 = vst [vmem:[#allocation2 + $0x40] sm:$0xff] %v854_v0  ;;  %59 = vst [vmem:[#allocation2 + $0x48] sm:$0xff] %v854_v0  ;;  %v119_v15 = vld [vmem:[#allocation3 + $0xa0] sm:$0xff]  ;;  %v120_v16 = vld [vmem:[#allocation3 + $0xa8] sm:$0xff]  ;;  %v650_v17 = vpack.c.bf16 %v102_v14, %v101_v12  ;;  %649 = vmatprep.subr.bf16.mxu0 %v648_v9 }
  0x2c   :  { %60 = vst [vmem:[#allocation2 + $0x50] sm:$0xff] %v854_v0  ;;  %61 = vst [vmem:[#allocation2 + $0x58] sm:$0xff] %v854_v0  ;;  %v133_v18 = vld [vmem:[#allocation3 + $0x110] sm:$0xff]  ;;  %v134_v19 = vld [vmem:[#allocation3 + $0x118] sm:$0xff]  ;;  %677 = vmatprep.subr.bf16.mxu1 %v676_v13  ;;  %v652_v20 = vpack.c.bf16 %v120_v16, %v119_v15 }
  0x2d   :  { %v680_v21 = vpack.c.bf16 %v134_v19, %v133_v18  ;;  %v103_v22 = vld [vmem:[#allocation3 + $0x20] sm:$0xff]  ;;  %v104_v23 = vld [vmem:[#allocation3 + $0x28] sm:$0xff]  ;;  %v121_v24 = vld [vmem:[#allocation3 + $0xb0] sm:$0xff]  ;;  %679 = vmatpush3.bf16.msra.mxu1 %v676_v13 }
  0x2e   :  { %v122_v25 = vld [vmem:[#allocation3 + $0xb8] sm:$0xff]  ;;  %v135_v26 = vld [vmem:[#allocation3 + $0x120] sm:$0xff]  ;;  %v136_v27 = vld [vmem:[#allocation3 + $0x128] sm:$0xff]  ;;  %651 = vmatpush3.bf16.msra.mxu0 %v650_v17  ;;  %v654_v29 = vpack.c.bf16 %v104_v23, %v103_v22 }
  0x2f   :  { %681 = vmatprep.subr.bf16.mxu1 %v680_v21  ;;  %v684_v28 = vpack.c.bf16 %v136_v27, %v135_v26  ;;  %v137_v30 = vld [vmem:[#allocation3 + $0x130] sm:$0xff]  ;;  %v138_v31 = vld [vmem:[#allocation3 + $0x138] sm:$0xff]  ;;  %653 = vmatprep.subr.bf16.mxu0 %v652_v20  ;;  %v656_v32 = vpack.c.bf16 %v122_v25, %v121_v24  ;;  %v123_v35 = vld [vmem:[#allocation3 + $0xc0] sm:$0xff] }
  0x30   :  { %v105_v33 = vld [vmem:[#allocation3 + $0x30] sm:$0xff]  ;;  %v106_v34 = vld [vmem:[#allocation3 + $0x38] sm:$0xff]  ;;  %v124_v36 = vld [vmem:[#allocation3 + $0xc8] sm:$0xff]  ;;  %v688_v37 = vpack.c.bf16 %v138_v31, %v137_v30 }
  0x31   :  { %683 = vmatpush3.bf16.msra.mxu1 %v680_v21  ;;  %v658_v38 = vpack.c.bf16 %v106_v34, %v105_v33  ;;  %v139_v39 = vld [vmem:[#allocation3 + $0x140] sm:$0xff]  ;;  %v140_v40 = vld [vmem:[#allocation3 + $0x148] sm:$0xff]  ;;  %v660_v41 = vpack.c.bf16 %v124_v36, %v123_v35  ;;  %v125_v44 = vld [vmem:[#allocation3 + $0xd0] sm:$0xff] }
  0x32   :  { %685 = vmatprep.subr.bf16.mxu1 %v684_v28  ;;  %655 = vmatpush3.bf16.msra.mxu0 %v654_v29  ;;  %v107_v42 = vld [vmem:[#allocation3 + $0x40] sm:$0xff]  ;;  %v108_v43 = vld [vmem:[#allocation3 + $0x48] sm:$0xff]  ;;  %v126_v45 = vld [vmem:[#allocation3 + $0xd8] sm:$0xff]  ;;  %v692_v46 = vpack.c.bf16 %v140_v40, %v139_v39 }
  0x33   :  { %657 = vmatprep.subr.bf16.mxu0 %v656_v32  ;;  %v109_v47 = vld [vmem:[#allocation3 + $0x50] sm:$0xff]  ;;  %v110_v48 = vld [vmem:[#allocation3 + $0x58] sm:$0xff]  ;;  %v662_v51 = vpack.c.bf16 %v108_v43, %v107_v42  ;;  %v127_v52 = vld [vmem:[#allocation3 + $0xe0] sm:$0xff]  ;;  %v664_v57 = vpack.c.bf16 %v126_v45, %v125_v44 }
  0x34   :  { %v71_v49 = vld [vmem:[%s980_s0 + $0x1] sm:$0xff]  ;;  %v128_v53 = vld [vmem:[#allocation3 + $0xe8] sm:$0xff]  ;;  %v72_v56 = vld [vmem:[%s980_s0 + $0x9] sm:$0xff]  ;;  %v666_v4 = vpack.c.bf16 %v110_v48, %v109_v47 }
  0x35   :  { %687 = vmatpush3.bf16.msra.mxu1 %v684_v28  ;;  %v62_v50 = vld [vmem:[%s980_s0] sm:$0xff]  ;;  %v142_v55 = vld [vmem:[#allocation3 + $0x158] sm:$0xff]  ;;  %75 = vst.msk [vmem:[#allocation2 + $0x8] sm:$0xff] %vm66_vm0, %v71_v49  ;;  %76 = vst.msk [vmem:[#allocation2 + $0x20] sm:$0xff] %vm66_vm0, %v72_v56  ;;  %v668_v7 = vpack.c.bf16 %v128_v53, %v127_v52 }
  0x36   :  { %689 = vmatprep.subr.bf16.mxu1 %v688_v37  ;;  %659 = vmatpush3.bf16.msra.mxu0 %v658_v38  ;;  %v141_v54 = vld [vmem:[#allocation3 + $0x150] sm:$0xff]  ;;  %67 = vst.msk [vmem:[#allocation2] sm:$0xff] %vm66_vm0, %v62_v50  ;;  %v63_v59 = vld [vmem:[%s980_s0 + $0x8] sm:$0xff]  ;;  %v64_v62 = vld [vmem:[%s980_s0 + $0x18] sm:$0xff] }
  0x37   :  { %661 = vmatprep.subr.bf16.mxu0 %v660_v41  ;;  %v79_v58 = vld [vmem:[%s980_s0 + $0x2] sm:$0xff]  ;;  %v80_v60 = vld [vmem:[%s980_s0 + $0xa] sm:$0xff]  ;;  %68 = vst.msk [vmem:[#allocation2 + $0x18] sm:$0xff] %vm66_vm0, %v63_v59  ;;  %v73_v61 = vld [vmem:[%s980_s0 + $0x19] sm:$0xff]  ;;  %v696_v0 = vpack.c.bf16 %v142_v55, %v141_v54 }
  0x38   :  { %83 = vst.msk [vmem:[#allocation2 + $0x10] sm:$0xff] %vm66_vm0, %v79_v58  ;;  %84 = vst.msk [vmem:[#allocation2 + $0x28] sm:$0xff] %vm66_vm0, %v80_v60  ;;  %v74_v63 = vld [vmem:[%s980_s0 + $0x21] sm:$0xff]  ;;  %v143_v5 = vld [vmem:[#allocation3 + $0x160] sm:$0xff] }
  0x39   :  { %691 = vmatpush3.bf16.msra.mxu1 %v688_v37  ;;  %77 = vst.msk [vmem:[#allocation2 + $0x38] sm:$0xff] %vm66_vm0, %v73_v61  ;;  %69 = vst.msk [vmem:[#allocation2 + $0x30] sm:$0xff] %vm66_vm0, %v64_v62  ;;  %v81_v1 = vld [vmem:[%s980_s0 + $0x1a] sm:$0xff]  ;;  %v82_v3 = vld [vmem:[%s980_s0 + $0x22] sm:$0xff] }
  0x3a   :  { %693 = vmatprep.subr.bf16.mxu1 %v692_v46  ;;  %78 = vst.msk [vmem:[#allocation2 + $0x50] sm:$0xff] %vm66_vm0, %v74_v63  ;;  %v65_v2 = vld [vmem:[%s980_s0 + $0x20] sm:$0xff]  ;;  %663 = vmatpush3.bf16.msra.mxu0 %v662_v51  ;;  %v144_v6 = vld [vmem:[#allocation3 + $0x168] sm:$0xff]  ;;  %85 = vst.msk [vmem:[#allocation2 + $0x40] sm:$0xff] %vm66_vm0, %v81_v1 }
  0x3b   :  { %70 = vst.msk [vmem:[#allocation2 + $0x48] sm:$0xff] %vm66_vm0, %v65_v2  ;;  %86 = vst.msk [vmem:[#allocation2 + $0x58] sm:$0xff] %vm66_vm0, %v82_v3  ;;  %665 = vmatprep.subr.bf16.mxu0 %v664_v57  ;;  %v111_v8 = vld [vmem:[#allocation3 + $0x60] sm:$0xff]  ;;  %v112_v9 = vld [vmem:[#allocation3 + $0x68] sm:$0xff]  ;;  %v700_v12 = vpack.c.bf16 %v144_v6, %v143_v5 }
  0x3c   :  { %v129_v10 = vld [vmem:[#allocation3 + $0xf0] sm:$0xff]  ;;  %v130_v11 = vld [vmem:[#allocation3 + $0xf8] sm:$0xff]  ;;  %v88_v13 = vld [vmem:[#allocation2 + $0x8] sm:$0xff]  ;;  %v670_v14 = vpack.c.bf16 %v112_v9, %v111_v8 }
  0x3d   :  { %695 = vmatpush3.bf16.msra.mxu1 %v692_v46  ;;  %216 = vmatprep.mubr.f32.mxu0 %v88_v13  ;;  %v145_v15 = vld [vmem:[#allocation3 + $0x170] sm:$0xff]  ;;  %v146_v16 = vld [vmem:[#allocation3 + $0x178] sm:$0xff]  ;;  %v672_v17 = vpack.c.bf16 %v130_v11, %v129_v10  ;;  %v326_v21 = vld [vmem:[#allocation6] sm:$0xff] }
  0x3e   :  { %697 = vmatprep.subr.bf16.mxu1 %v696_v0  ;;  %667 = vmatpush3.bf16.msra.mxu0 %v666_v4  ;;  %v113_v18 = vld [vmem:[#allocation3 + $0x70] sm:$0xff]  ;;  %v114_v19 = vld [vmem:[#allocation3 + $0x78] sm:$0xff]  ;;  %v327_v22 = vld [vmem:[#allocation6 + $0x8] sm:$0xff]  ;;  %v704_v23 = vpack.c.bf16 %v146_v16, %v145_v15 }
  0x3f   :  { %669 = vmatprep.subr.bf16.mxu0 %v668_v7  ;;  %v89_v20 = vld [vmem:[#allocation2 + $0x10] sm:$0xff]  ;;  %v674_v24 = vpack.c.bf16 %v114_v19, %v113_v18  ;;  %v708_v25 = vpack.c.bf16 %v327_v22, %v326_v21  ;;  %v329_v27 = vld [vmem:[#allocation6 + $0x18] sm:$0xff]  ;;  %v87_v28 = vld [vmem:[#allocation2] sm:$0xff] }
  0x40   :  { %600 = vmatprep.mubr.f32.mxu1 %v89_v20  ;;  %v328_v26 = vld [vmem:[#allocation6 + $0x10] sm:$0xff]  ;;  %v91_v29 = vld [vmem:[#allocation2 + $0x20] sm:$0xff]  ;;  %v92_v31 = vld [vmem:[#allocation2 + $0x28] sm:$0xff] }
  0x41   :  { %699 = vmatpush3.bf16.msra.mxu1 %v696_v0  ;;  %v712_v30 = vpack.c.bf16 %v329_v27, %v328_v26  ;;  %v330_v32 = vld [vmem:[#allocation6 + $0x20] sm:$0xff]  ;;  %v331_v33 = vld [vmem:[#allocation6 + $0x28] sm:$0xff]  ;;  %v90_v35 = vld [vmem:[#allocation2 + $0x18] sm:$0xff] }
  0x42   :  { %701 = vmatprep.subr.bf16.mxu1 %v700_v12  ;;  %671 = vmatpush3.bf16.msra.mxu0 %v670_v14  ;;  %v95_v34 = vld [vmem:[#allocation2 + $0x40] sm:$0xff]  ;;  %v94_v36 = vld [vmem:[#allocation2 + $0x38] sm:$0xff]  ;;  %v716_v37 = vpack.c.bf16 %v331_v33, %v330_v32  ;;  %v332_v39 = vld [vmem:[#allocation6 + $0x30] sm:$0xff] }
  0x43   :  { %673 = vmatprep.subr.bf16.mxu0 %v672_v17  ;;  %v98_v38 = vld [vmem:[#allocation2 + $0x58] sm:$0xff]  ;;  %v93_v41 = vld [vmem:[#allocation2 + $0x30] sm:$0xff]  ;;  %v334_v44 = vld [vmem:[#allocation6 + $0x40] sm:$0xff] }
  0x44   :  { %v333_v40 = vld [vmem:[#allocation6 + $0x38] sm:$0xff]  ;;  %v97_v42 = vld [vmem:[#allocation2 + $0x50] sm:$0xff]  ;;  %v335_v45 = vld [vmem:[#allocation6 + $0x48] sm:$0xff] }
  0x45   :  { %703 = vmatpush3.bf16.msra.mxu1 %v700_v12  ;;  %v720_v43 = vpack.c.bf16 %v333_v40, %v332_v39  ;;  %v96_v46 = vld [vmem:[#allocation2 + $0x48] sm:$0xff]  ;;  %v724_v47 = vpack.c.bf16 %v335_v45, %v334_v44  ;;  %v336_v48 = vld [vmem:[#allocation6 + $0x50] sm:$0xff]  ;;  %v337_v49 = vld [vmem:[#allocation6 + $0x58] sm:$0xff] }
  0x46   :  { %705 = vmatprep.subr.bf16.mxu1 %v704_v23  ;;  %675 = vmatpush3.bf16.msra.mxu0 %v674_v24  ;;  %v728_v50 = vpack.c.bf16 %v337_v49, %v336_v48  ;;  %v338_v51 = vld [vmem:[#allocation6 + $0x60] sm:$0xff]  ;;  %v339_v52 = vld [vmem:[#allocation6 + $0x68] sm:$0xff]  ;;  %v340_v54 = vld [vmem:[#allocation6 + $0x70] sm:$0xff] }
  0x47   :  { %709 = vmatprep.subr.bf16.mxu0 %v708_v25  ;;  %v732_v53 = vpack.c.bf16 %v339_v52, %v338_v51  ;;  %v341_v55 = vld [vmem:[#allocation6 + $0x78] sm:$0xff]  ;;  %v478_v59 = vld [vmem:[%s983_s3] ss:$0 sm:$0xff]  ;;  %v479_v22 = vld [vmem:[%s983_s3 + $0x1] ss:$0 sm:$0xff]  ;;  %s855_s3 = smov [#allocation8]  }
  0x48   :  { %v736_v56 = vpack.c.bf16 %v341_v55, %v340_v54  ;;  %s465_s14 = sshll.u32 %s855_s3, 4  ;;  %s466_s14 = int_to_ptr.vmem [resolvable:$true] %s465_s14 }
  0x49   :  { %707 = vmatpush3.bf16.msra.mxu1 %v704_v23  ;;  %217 = vmatmul.mubr.f32.vlgmr.msra.gmra.mrb[0].mxu0 %v87_v28  ;;  %s822_s15 = scalar_lea.vmem %s466_s14, 512  ;;  %p827_p3 = scmp.lt.s32.totalorder %s466_s14, %s466_s14 }
  0x4a   :  { %740 = vmatprep.subr.bf16.mxu1 %v708_v25  ;;  %221 = vmatprep.mubr.f32.mxu0 %v91_v29  ;;  %p823_p2 = scmp.ne.s32.totalorder %s466_s14, %s822_s15  ;;  %p828_p4 = scmp.lt.s32.totalorder %s822_s15, %s822_s15 }
  0x4b   :  { %711 = vmatpush3.bf16.msra.mxu0 %v708_v25 }
  0x4c   :  { %601 = vmatmul.mubr.f32.vlgmr.msra.gmra.mrb[0].mxu1 %v92_v31  ;;  %713 = vmatprep.subr.bf16.mxu0 %v712_v30  ;;  %p829_p5 = por %p828_p4, %p827_p3 }
  0x4d   :  { %603 = vmatprep.mubr.f32.mxu1 %v95_v34  ;;  %748 = vmatpush3.bf16.msra.mxu1 %v708_v25 }
  0x4e   :  { %222 = vmatmul.mubr.f32.gmra.mrb[2].mxu0 %v90_v35  ;;  %741 = vmatprep.subr.bf16.mxu1 %v712_v30  ;;  %p830_p6 = pnand %p829_p5, %p823_p2 }
  0x4f   :  { %226 = vmatprep.mubr.f32.mxu0 %v94_v36  ;;  %715 = vmatpush3.bf16.msra.mxu0 %v712_v30 }
  0x50   :  { %604 = vmatmul.mubr.f32.gmra.mrb[2].mxu1 %v98_v38  ;;  %717 = vmatprep.subr.bf16.mxu0 %v716_v37 }
  0x51   :  { %749 = vmatpush3.bf16.msra.mxu1 %v712_v30 }
  0x52   :  { %227 = vmatmul.mubr.f32.gmra.mrb[4].mxu0 %v93_v41  ;;  %742 = vmatprep.subr.bf16.mxu1 %v716_v37 }
  0x53   :  { %231 = vmatprep.mubr.f32.mxu0 %v97_v42  ;;  %719 = vmatpush3.bf16.msra.mxu0 %v716_v37 }
  0x54   :  { %721 = vmatprep.subr.bf16.mxu0 %v720_v43 }
  0x55   :  { %750 = vmatpush3.bf16.msra.mxu1 %v716_v37 }
  0x56   :  { %232 = vmatmul.mubr.f32.gmra.mrb[6].mxu0 %v96_v46  ;;  %743 = vmatprep.subr.bf16.mxu1 %v720_v43 }
  0x57   :  { %723 = vmatpush3.bf16.msra.mxu0 %v720_v43 }
  0x58   :  { %725 = vmatprep.subr.bf16.mxu0 %v724_v47 }
  0x59   :  { %751 = vmatpush3.bf16.msra.mxu1 %v720_v43 }
  0x5a   :  { %744 = vmatprep.subr.bf16.mxu1 %v724_v47 }
  0x5b   :  { %727 = vmatpush3.bf16.msra.mxu0 %v724_v47 }
  0x5c   :  { %729 = vmatprep.subr.bf16.mxu0 %v728_v50 }
  0x5d   :  { %752 = vmatpush3.bf16.msra.mxu1 %v724_v47 }
  0x5e   :  { %745 = vmatprep.subr.bf16.mxu1 %v728_v50 }
  0x5f   :  { %731 = vmatpush3.bf16.msra.mxu0 %v728_v50 }
  0x60   :  { %733 = vmatprep.subr.bf16.mxu0 %v732_v53 }
  0x61   :  { %753 = vmatpush3.bf16.msra.mxu1 %v728_v50 }
  0x62   :  { %746 = vmatprep.subr.bf16.mxu1 %v732_v53 }
  0x63   :  { %735 = vmatpush3.bf16.msra.mxu0 %v732_v53 }
  0x64   :  { %737 = vmatprep.subr.bf16.mxu0 %v736_v56 }
  0x65   :  { %754 = vmatpush3.bf16.msra.mxu1 %v732_v53 }
  0x66   :  { %747 = vmatprep.subr.bf16.mxu1 %v736_v56 }
  0x67   :  { %739 = vmatpush3.bf16.msra.mxu0 %v736_v56 }
  0x69   :  { %755 = vmatpush3.bf16.msra.mxu1 %v736_v56 }
 0x11c   :  { %v516_v57 = vpop.f32.mrb[0].mxu0 }
 0x11d   :  { %v517_v58 = vpop.f32.mrb[1].mxu0 }
 0x11e   :  { %v518_v60 = vadd.f32 %v517_v58, %v516_v57 }
 0x11f   :  { %v602_v61 = vpop.f32.mrb[0].mxu1 }
 0x120   :  { %v303_v62 = vpop.f32.mrb[1].mxu1  ;;  %v219_v0 = vadd.f32 %v518_v60, %v478_v59 }
 0x121   :  { %v519_v63 = vpop.f32.mrb[2].mxu0 }
 0x122   :  { %v520_v1 = vpop.f32.mrb[3].mxu0  ;;  %v304_v3 = vadd.f32 %v303_v62, %v219_v0 }
 0x123   :  { %v521_v2 = vadd.f32 %v520_v1, %v519_v63  ;;  %v605_v4 = vpop.f32.mrb[2].mxu1 }
 0x124   :  { %v313_v5 = vpop.f32.mrb[3].mxu1  ;;  %v322_v7 = vmax.f32 %v304_v3, 0.0 }
 0x125   :  { %v224_v6 = vadd.f32 %v521_v2, %v478_v59  ;;  %v522_v8 = vpop.f32.mrb[4].mxu0 }
 0x126   :  { %v523_v9 = vpop.f32.mrb[5].mxu0  ;;  %638 = vmatprep.mubr.f32.mxu0 %v322_v7 }
 0x127   :  { %v309_v10 = vadd.f32 %v602_v61, %v224_v6  ;;  %v524_v11 = vadd.f32 %v523_v9, %v522_v8 }
 0x129   :  { %v323_v12 = vmax.f32 %v309_v10, 0.0  ;;  %v525_v13 = vpop.f32.mrb[6].mxu0  ;;  %v229_v14 = vadd.f32 %v524_v11, %v478_v59 }
 0x12a   :  { %v526_v15 = vpop.f32.mrb[7].mxu0 }
 0x12b   :  { %v527_v16 = vadd.f32 %v526_v15, %v525_v13  ;;  %v314_v17 = vadd.f32 %v313_v5, %v229_v14  ;;  %639 = vmatmul.mubr.f32.vlgmr.msra.gmra.mrb[8].mxu0 %v323_v12 }
 0x12d   :  { %v234_v18 = vadd.f32 %v527_v16, %v478_v59  ;;  %v324_v19 = vmax.f32 %v314_v17, 0.0 }
 0x12f   :  { %v319_v20 = vadd.f32 %v605_v4, %v234_v18  ;;  %641 = vmatprep.mubr.f32.mxu1 %v324_v19 }
 0x131   :  { %v325_v21 = vmax.f32 %v319_v20, 0.0 }
 0x133   :  { %642 = vmatmul.mubr.f32.vlgmr.msra.gmra.mrb[4].mxu1 %v325_v21 }
 0x1fe   :  { %v640_v23 = vpop.f32.mrb[8].mxu0 }
 0x1ff   :  { %v419_v24 = vadd.f32 %v640_v23, %v479_v22  ;;  %v413_v25 = vpop.f32.mrb[9].mxu0 }
 0x200   :  { %v414_v26 = vadd.f32 %v479_v22, %v413_v25 }
 0x201   :  { %v481_v27 = vmul.f32 -1.442695, %v419_v24 }
 0x202   :  { %v480_v28 = vmul.f32 -1.442695, %v414_v26 }
 0x203   :  { %762 = vpow2.f32 %v481_v27 }
 0x204   :  { %764 = vpow2.f32 %v480_v28 }
 0x206   :  { %v643_v29 = vpop.f32.mrb[4].mxu1 }
 0x207   :  { %v429_v30 = vadd.f32 %v643_v29, %v479_v22  ;;  %v423_v31 = vpop.f32.mrb[5].mxu1 }
 0x208   :  { %v424_v32 = vadd.f32 %v479_v22, %v423_v31 }
 0x209   :  { %v483_v33 = vmul.f32 -1.442695, %v429_v30 }
 0x20a   :  { %v482_v34 = vmul.f32 -1.442695, %v424_v32 }
 0x20b   :  { %766 = vpow2.f32 %v483_v33 }
 0x20c   :  { %768 = vpow2.f32 %v482_v34 }
 0x20d   :  { %v763_v35 = vpop.eup %762 }
 0x20e   :  { %v765_v36 = vpop.eup %764  ;;  %v445_v37 = vadd.f32 1.0, %v763_v35 }
 0x20f   :  { %v444_v38 = vadd.f32 1.0, %v765_v36 }
 0x210   :  { %770 = vrcp.f32 %v445_v37 }
 0x211   :  { %772 = vrcp.f32 %v444_v38 }
 0x215   :  { %v767_v39 = vpop.eup %766 }
 0x216   :  { %v769_v40 = vpop.eup %768  ;;  %v447_v41 = vadd.f32 1.0, %v767_v39 }
 0x217   :  { %v446_v42 = vadd.f32 1.0, %v769_v40 }
 0x218   :  { %774 = vrcp.f32 %v447_v41 }
 0x219   :  { %776 = vrcp.f32 %v446_v42 }
 0x21a   :  { %v771_v43 = vpop.eup %770 }
 0x21b   :  { %v773_v44 = vpop.eup %772  ;;  %457 = vst [vmem:[#allocation8 + $0x8] sm:$0xff] %v771_v43 }
 0x21c   :  { %456 = vst [vmem:[#allocation8] sm:$0xff] %v773_v44 }
 0x222   :  { %v775_v45 = vpop.eup %774 }
 0x223   :  { %v777_v46 = vpop.eup %776  ;;  %459 = vst [vmem:[#allocation8 + $0x18] sm:$0xff] %v775_v45 }
 0x224   :  { %458 = vst [vmem:[#allocation8 + $0x10] sm:$0xff] %v777_v46 }
 0x225   :  { %833 = shalt.err (!%p830_p6)
}
 0x226   :  { %s834_s18 = scalar_lea.hbm %s984_s4, 512 }
 0x227   :  { %p835_p7 = scmp.ne.s32.totalorder %s984_s4, %s834_s18  ;;  %p838_p8 = scmp.lt.u32.totalorder %s834_s18, %s984_s4 }
 0x229   :  { %p840_p9 = pnand %p838_p8, %p835_p7 }
 0x22b   :  { %843 = shalt.err (!%p840_p9)
}
 0x22c   :  { %471 = dma.vmem_to_hbm [thread:$0]  %s466_s14, 512, %s984_s4, [#allocation5], %s851_s25, %s851_s25, %s852_s26  }
 0x22d   :  { %848 = dma.done.wait [#allocation5], 512  }
 0x22e   :  { %849 = vsyncadd [#allocation5], 4294966784 }
 0x22f   :  { %475 = vsyncpa [#allocation4], 1 }
 0x230   :  { %476 = vsyncpa [#allocation7], 1 }
 0x231   :  { %477 = vsyncpa [#allocation5], 1 }

</bundles_post_ra>
